<compile_context>
chip_gen: v7x
topology: tpu7x:2x2x1
jax: 0.10.0
libtpu: 0.0.40
codegen_flags: <defaults>
</compile_context>

<pallas_src>
import math
import functools

import jax
import jax.numpy as jnp
from jax.experimental import pallas as pl
from jax.experimental.pallas import tpu as pltpu


def _pick_tile(dim, cap, align):
    """Largest tile <= cap that divides `dim` and is a multiple of `align`.
    Falls back to the full dim (single block), which always satisfies the
    TPU (8, 128) block-shape rule ('block dim equals full array dim')."""
    if dim <= cap:
        return dim
    t = (cap // align) * align
    while t >= align:
        if dim % t == 0:
            return t
        t -= align
    return dim


# -----------------------------------------------------------------------------
# Forward kernel
# -----------------------------------------------------------------------------
def _stochastic_linear_kernel(x_ref, wm_ref, wv_ref, eps_w_ref, eps_b_ref,
                              qb_mean_ref, qb_var_ref, out_ref,
                              acc_mu_ref, acc_var_ref):
    k = pl.program_id(2)

    @pl.when(k == 0)
    def _init():
        acc_mu_ref[...] = jnp.zeros_like(acc_mu_ref)
        acc_var_ref[...] = jnp.zeros_like(acc_var_ref)

    x = x_ref[...]                                              # (tm, tk)
    # Weights arrive pre-transposed as (tk, tn): plain (M,K)@(K,N) on the MXU.
    acc_mu_ref[...] += jnp.dot(x, wm_ref[...],
                               preferred_element_type=jnp.float32)
    acc_var_ref[...] += jnp.dot(x, wv_ref[...],
                                preferred_element_type=jnp.float32)

    @pl.when(k == pl.num_programs(2) - 1)
    def _finalize():
        out_ref[...] = (1e-8 + acc_mu_ref[...]
                        + acc_var_ref[...] * eps_w_ref[...]
                        + qb_mean_ref[...]                      # (1, tn) bcast
                        + qb_var_ref[...] * eps_b_ref[...])


# -----------------------------------------------------------------------------
# Monte-Carlo KL kernel, grid over the sample axis S
# -----------------------------------------------------------------------------
def _kl_mc_kernel(qw_mean_ref, qw_logvar_ref, qb_mean_ref, qb_logvar_ref,
                  eps_w_ref, eps_b_ref, kl_ref, std_w_ref, std_b_ref,
                  *, n_samples):
    s = pl.program_id(0)

    @pl.when(s == 0)
    def _init():
        # Closed form: log(std) = 0.5*(1 + logvar)  (no exp followed by log on
        # the single-issue EUP).  std is cached in VMEM scratch and reused for
        # every sample.  The -sum(log std) term is identical for each sample,
        # so it is added once here pre-scaled by n_samples (the final step
        # divides the whole accumulator by n_samples).
        log_std_w = 0.5 * (1.0 + qw_logvar_ref[...])            # (O, I)
        log_std_b = 0.5 * (1.0 + qb_logvar_ref[...])            # (1, O)
        std_w_ref[...] = jnp.exp(log_std_w)
        std_b_ref[...] = jnp.exp(log_std_b)
        const = -(jnp.sum(log_std_w) + jnp.sum(log_std_b)) * float(n_samples)
        kl_ref[...] = jnp.reshape(const, (1, 1))

    eps_w = eps_w_ref[0]                                        # (O, I)
    eps_b = eps_b_ref[0]                                        # (1, O)
    w_sample = qw_mean_ref[...] + std_w_ref[...] * eps_w
    b_sample = qb_mean_ref[...] + std_b_ref[...] * eps_b

    # log q(theta) - log p(theta) with p = N(0, 1):
    #     -0.5*eps^2 - log(std) + 0.5*sample^2
    # (0.5*log(2*pi) cancels; the -log(std) part was hoisted into s == 0).
    stoch = 0.5 * (jnp.sum(w_sample * w_sample - eps_w * eps_w)
                   + jnp.sum(b_sample * b_sample - eps_b * eps_b))
    kl_ref[...] += jnp.reshape(stoch, (1, 1))

    @pl.when(s == n_samples - 1)
    def _finalize():
        kl_ref[...] = kl_ref[...] * (1.0 / float(n_samples))


# -----------------------------------------------------------------------------
# Wrapper
# -----------------------------------------------------------------------------
def stochastic_linear_forward(x, qw_mean, qw_logvar, qb_mean, qb_logvar,
                              eps_w, eps_b, eps_w_kl, eps_b_kl, n_samples):
    B, I = x.shape
    O = qw_mean.shape[0]

    # Wrapper-side prep, done once per call:
    #  - transpose weights to (I, O) so the kernel never transposes on the XLU
    #  - exp(1 + logvar) computed once (not once per B tile on the EUP)
    wm_t = qw_mean.T                                            # (I, O)
    wv_t = jnp.exp(1.0 + qw_logvar).T                           # (I, O)
    qb_mean2 = qb_mean.reshape(1, O)
    qb_logvar2 = qb_logvar.reshape(1, O)
    qb_var2 = jnp.exp(1.0 + qb_logvar2)

    # Tile sizes: lane-dense O tiles (multiples of 128 when tiled), sublane
    # aligned B tiles, larger K tiles.  Sized to fit comfortably inside the
    # 32 MiB scoped VMEM limit even on v7x (64 MiB physical).
    tm = _pick_tile(B, 256, 8)
    tn = _pick_tile(O, 256, 128)
    tk = _pick_tile(I, 512, 128)
    grid = (B // tm, O // tn, I // tk)

    fwd_params = pltpu.CompilerParams(
        dimension_semantics=("parallel", "parallel", "arbitrary"),
        vmem_limit_bytes=32 * 1024 * 1024)

    out = pl.pallas_call(
        _stochastic_linear_kernel,
        out_shape=jax.ShapeDtypeStruct((B, O), jnp.float32),
        grid_spec=pltpu.PrefetchScalarGridSpec(
            num_scalar_prefetch=0,
            grid=grid,
            in_specs=[
                pl.BlockSpec((tm, tk), lambda i, j, k: (i, k)),   # x
                pl.BlockSpec((tk, tn), lambda i, j, k: (k, j)),   # qw_mean^T
                pl.BlockSpec((tk, tn), lambda i, j, k: (k, j)),   # qw_var^T
                pl.BlockSpec((tm, tn), lambda i, j, k: (i, j)),   # eps_w
                pl.BlockSpec((tm, tn), lambda i, j, k: (i, j)),   # eps_b
                pl.BlockSpec((1, tn), lambda i, j, k: (0, j)),    # qb_mean
                pl.BlockSpec((1, tn), lambda i, j, k: (0, j)),    # qb_var
            ],
            out_specs=pl.BlockSpec((tm, tn), lambda i, j, k: (i, j)),
            scratch_shapes=[pltpu.VMEM((tm, tn), jnp.float32),
                            pltpu.VMEM((tm, tn), jnp.float32)]),
        compiler_params=fwd_params,
    )(x, wm_t, wv_t, eps_w, eps_b, qb_mean2, qb_var2)

    # --- KL kernel: grid over the Monte-Carlo sample axis S.  Weight params
    # have a constant block index (stay resident in VMEM, fetched once); only
    # the per-sample noise slice is streamed each step; the (1,1) output block
    # is the accumulator.
    S = int(n_samples)
    eps_b_kl3 = eps_b_kl.reshape(S, 1, O)

    kl_params = pltpu.CompilerParams(
        dimension_semantics=("arbitrary",),
        vmem_limit_bytes=32 * 1024 * 1024)

    kl = pl.pallas_call(
        functools.partial(_kl_mc_kernel, n_samples=S),
        out_shape=jax.ShapeDtypeStruct((1, 1), jnp.float32),
        grid_spec=pltpu.PrefetchScalarGridSpec(
            num_scalar_prefetch=0,
            grid=(S,),
            in_specs=[
                pl.BlockSpec((O, I), lambda s: (0, 0)),           # qw_mean
                pl.BlockSpec((O, I), lambda s: (0, 0)),           # qw_logvar
                pl.BlockSpec((1, O), lambda s: (0, 0)),           # qb_mean
                pl.BlockSpec((1, O), lambda s: (0, 0)),           # qb_logvar
                pl.BlockSpec((1, O, I), lambda s: (s, 0, 0)),     # eps_w slice
                pl.BlockSpec((1, 1, O), lambda s: (s, 0, 0)),     # eps_b slice
            ],
            out_specs=pl.BlockSpec((1, 1), lambda s: (0, 0)),
            scratch_shapes=[pltpu.VMEM((O, I), jnp.float32),      # std_w cache
                            pltpu.VMEM((1, O), jnp.float32)]),    # std_b cache
        compiler_params=kl_params,
    )(qw_mean, qw_logvar, qb_mean2, qb_logvar2, eps_w_kl, eps_b_kl3)

    return out, kl[0, 0]


_forward_jit = jax.jit(stochastic_linear_forward, static_argnums=(9,))


# -----------------------------------------------------------------------------
# Pure-JAX reference mirroring the torch module semantics
# -----------------------------------------------------------------------------
def _reference_forward(x, qw_mean, qw_logvar, qb_mean, qb_logvar,
                       eps_w, eps_b, eps_w_kl, eps_b_kl, n_samples):
    qw_var = jnp.exp(1.0 + qw_logvar)
    qb_var = jnp.exp(1.0 + qb_logvar)
    x_w_mu = x @ qw_mean.T
    x_w_var = x @ qw_var.T
    out = (1e-8 + x_w_mu + x_w_var * eps_w
           + qb_mean[None, :] + qb_var[None, :] * eps_b)

    # Monte-Carlo KL with full Normal log_prob formulas (p = N(0, 1)).
    log2pi = math.log(2.0 * math.pi)
    qw_std = jnp.sqrt(qw_var)
    qb_std = jnp.sqrt(qb_var)
    w_s = qw_mean[None] + qw_std[None] * eps_w_kl                 # (S, O, I)
    b_s = qb_mean[None] + qb_std[None] * eps_b_kl                 # (S, O)
    log_qw = -0.5 * ((w_s - qw_mean[None]) / qw_std[None]) ** 2 \
             - jnp.log(qw_std)[None] - 0.5 * log2pi
    log_qb = -0.5 * ((b_s - qb_mean[None]) / qb_std[None]) ** 2 \
             - jnp.log(qb_std)[None] - 0.5 * log2pi
    log_pw = -0.5 * w_s ** 2 - 0.5 * log2pi
    log_pb = -0.5 * b_s ** 2 - 0.5 * log2pi
    kl = (jnp.sum(log_qw - log_pw) + jnp.sum(log_qb - log_pb)) / n_samples
    return out, kl


if __name__ == "__main__":
    in_features = 32
    out_features = 32
    batch = 8
    n_samples = 10
    q_logvar_init = -5.0
    stdv = 10.0 / math.sqrt(in_features)

    key = jax.random.PRNGKey(0)
    k = jax.random.split(key, 9)

    # Deterministic parameter init, matching reset_parameters() distributions.
    qw_mean = jax.random.uniform(k[0], (out_features, in_features),
                                 jnp.float32, -stdv, stdv)
    qw_logvar = jax.random.uniform(k[1], (out_features, in_features),
                                   jnp.float32, -stdv, stdv) + q_logvar_init
    qb_mean = jax.random.uniform(k[2], (out_features,), jnp.float32, -stdv, stdv)
    qb_logvar = jax.random.uniform(k[3], (out_features,),
                                   jnp.float32, -stdv, stdv) + q_logvar_init
    # log_alpha exists in the module but is unused in forward(); omitted.

    x = jax.random.normal(k[4], (batch, in_features), jnp.float32)
    eps_w = jax.random.normal(k[5], (batch, out_features), jnp.float32)
    eps_b = jax.random.normal(k[6], (batch, out_features), jnp.float32)
    eps_w_kl = jax.random.normal(k[7], (n_samples, out_features, in_features),
                                 jnp.float32)
    eps_b_kl = jax.random.normal(k[8], (n_samples, out_features), jnp.float32)

    out, kl = _forward_jit(
        x, qw_mean, qw_logvar, qb_mean, qb_logvar,
        eps_w, eps_b, eps_w_kl, eps_b_kl, n_samples)
    out, kl = jax.block_until_ready((out, kl))

    ref_out, ref_kl = _reference_forward(
        x, qw_mean, qw_logvar, qb_mean, qb_logvar,
        eps_w, eps_b, eps_w_kl, eps_b_kl, n_samples)

    assert out.shape == (batch, out_features)
    assert jnp.allclose(out, ref_out, rtol=1e-5, atol=1e-5), "output mismatch"
    assert jnp.allclose(kl, ref_kl, rtol=1e-4, atol=1e-3), "kl mismatch"

    print("KERNEL_OK")
</pallas_src>

<mosaic_0001>
module attributes {stable_mosaic.version = 11 : i64} {
  func.func @_stochastic_linear_kernel(%arg0: i32, %arg1: i32, %arg2: i32, %arg3: memref<8x32xf32, #tpu.memory_space<vmem>>, %arg4: memref<32x32xf32, #tpu.memory_space<vmem>>, %arg5: memref<32x32xf32, #tpu.memory_space<vmem>>, %arg6: memref<8x32xf32, #tpu.memory_space<vmem>>, %arg7: memref<8x32xf32, #tpu.memory_space<vmem>>, %arg8: memref<1x32xf32, #tpu.memory_space<vmem>>, %arg9: memref<1x32xf32, #tpu.memory_space<vmem>>, %arg10: memref<8x32xf32, #tpu.memory_space<vmem>>, %arg11: memref<8x32xf32, #tpu.memory_space<vmem>>, %arg12: memref<8x32xf32, #tpu.memory_space<vmem>>) attributes {dimension_semantics = [#tpu.dimension_semantics<parallel>, #tpu.dimension_semantics<parallel>, #tpu.dimension_semantics<arbitrary>], iteration_bounds = array<i64: 1, 1, 1>, scalar_prefetch = 0 : i64, scratch_operands = 2 : i64, tpu.core_type = #tpu.core_type<tc>, window_params = [{transform_indices = @transform_0, window_bounds = array<i64: 8, 32>}, {transform_indices = @transform_1, window_bounds = array<i64: 32, 32>}, {transform_indices = @transform_2, window_bounds = array<i64: 32, 32>}, {transform_indices = @transform_3, window_bounds = array<i64: 8, 32>}, {transform_indices = @transform_4, window_bounds = array<i64: 8, 32>}, {transform_indices = @transform_5, window_bounds = array<i64: 1, 32>}, {transform_indices = @transform_6, window_bounds = array<i64: 1, 32>}, {transform_indices = @transform_7, window_bounds = array<i64: 8, 32>}]} {
    %c0_i32 = arith.constant 0 : i32
    %0 = arith.cmpi eq, %arg2, %c0_i32 : i32
    %1 = arith.extui %0 : i1 to i32
    %c0_i32_0 = arith.constant 0 : i32
    %2 = arith.cmpi ne, %1, %c0_i32_0 : i32
    scf.if %2 {
      %cst_17 = arith.constant 0.000000e+00 : f32
      %17 = vector.broadcast %cst_17 : f32 to vector<8x32xf32>
      %c0_18 = arith.constant 0 : index
      %c0_19 = arith.constant 0 : index
      %18 = vector.load %arg11[%c0_18, %c0_19] : memref<8x32xf32, #tpu.memory_space<vmem>>, vector<8x32xf32>
      tpu.vector_store %arg11[%c0_18, %c0_19], %17 {strides = array<i32>} : memref<8x32xf32, #tpu.memory_space<vmem>>, vector<8x32xf32>,
      %cst_20 = arith.constant 0.000000e+00 : f32
      %19 = vector.broadcast %cst_20 : f32 to vector<8x32xf32>
      %c0_21 = arith.constant 0 : index
      %c0_22 = arith.constant 0 : index
      %20 = vector.load %arg12[%c0_21, %c0_22] : memref<8x32xf32, #tpu.memory_space<vmem>>, vector<8x32xf32>
      tpu.vector_store %arg12[%c0_21, %c0_22], %19 {strides = array<i32>} : memref<8x32xf32, #tpu.memory_space<vmem>>, vector<8x32xf32>,
    } else {
    }
    %c0 = arith.constant 0 : index
    %c0_1 = arith.constant 0 : index
    %3 = vector.load %arg3[%c0, %c0_1] : memref<8x32xf32, #tpu.memory_space<vmem>>, vector<8x32xf32>
    %c0_2 = arith.constant 0 : index
    %c0_3 = arith.constant 0 : index
    %4 = vector.load %arg11[%c0_2, %c0_3] : memref<8x32xf32, #tpu.memory_space<vmem>>, vector<8x32xf32>
    %c0_4 = arith.constant 0 : index
    %c0_5 = arith.constant 0 : index
    %5 = vector.load %arg4[%c0_4, %c0_5] : memref<32x32xf32, #tpu.memory_space<vmem>>, vector<32x32xf32>
    %cst = arith.constant dense<0.000000e+00> : vector<8x32xf32>
    %6 = tpu.matmul %3, %5, %cst {dimension_numbers = #tpu.dot_dimension_numbers<[1], [0], [0], [1], [0, 0, 1, 1], [], []>} : vector<8x32xf32>, vector<32x32xf32>, vector<8x32xf32> -> vector<8x32xf32>
    %7 = arith.addf %4, %6 : vector<8x32xf32>
    %c0_6 = arith.constant 0 : index
    %c0_7 = arith.constant 0 : index
    %8 = vector.load %arg11[%c0_6, %c0_7] : memref<8x32xf32, #tpu.memory_space<vmem>>, vector<8x32xf32>
    tpu.vector_store %arg11[%c0_6, %c0_7], %7 {strides = array<i32>} : memref<8x32xf32, #tpu.memory_space<vmem>>, vector<8x32xf32>,
    %c0_8 = arith.constant 0 : index
    %c0_9 = arith.constant 0 : index
    %9 = vector.load %arg12[%c0_8, %c0_9] : memref<8x32xf32, #tpu.memory_space<vmem>>, vector<8x32xf32>
    %c0_10 = arith.constant 0 : index
    %c0_11 = arith.constant 0 : index
    %10 = vector.load %arg5[%c0_10, %c0_11] : memref<32x32xf32, #tpu.memory_space<vmem>>, vector<32x32xf32>
    %cst_12 = arith.constant dense<0.000000e+00> : vector<8x32xf32>
    %11 = tpu.matmul %3, %10, %cst_12 {dimension_numbers = #tpu.dot_dimension_numbers<[1], [0], [0], [1], [0, 0, 1, 1], [], []>} : vector<8x32xf32>, vector<32x32xf32>, vector<8x32xf32> -> vector<8x32xf32>
    %12 = arith.addf %9, %11 : vector<8x32xf32>
    %c0_13 = arith.constant 0 : index
    %c0_14 = arith.constant 0 : index
    %13 = vector.load %arg12[%c0_13, %c0_14] : memref<8x32xf32, #tpu.memory_space<vmem>>, vector<8x32xf32>
    tpu.vector_store %arg12[%c0_13, %c0_14], %12 {strides = array<i32>} : memref<8x32xf32, #tpu.memory_space<vmem>>, vector<8x32xf32>,
    %c0_i32_15 = arith.constant 0 : i32
    %14 = arith.cmpi eq, %arg2, %c0_i32_15 : i32
    %15 = arith.extui %14 : i1 to i32
    %c0_i32_16 = arith.constant 0 : i32
    %16 = arith.cmpi ne, %15, %c0_i32_16 : i32
    scf.if %16 {
      %c0_17 = arith.constant 0 : index
      %c0_18 = arith.constant 0 : index
      %17 = vector.load %arg11[%c0_17, %c0_18] : memref<8x32xf32, #tpu.memory_space<vmem>>, vector<8x32xf32>
      %cst_19 = arith.constant 9.99999993E-9 : f32
      %18 = vector.broadcast %cst_19 : f32 to vector<8x32xf32>
      %19 = arith.addf %18, %17 : vector<8x32xf32>
      %c0_20 = arith.constant 0 : index
      %c0_21 = arith.constant 0 : index
      %20 = vector.load %arg12[%c0_20, %c0_21] : memref<8x32xf32, #tpu.memory_space<vmem>>, vector<8x32xf32>
      %c0_22 = arith.constant 0 : index
      %c0_23 = arith.constant 0 : index
      %21 = vector.load %arg6[%c0_22, %c0_23] : memref<8x32xf32, #tpu.memory_space<vmem>>, vector<8x32xf32>
      %22 = arith.mulf %20, %21 : vector<8x32xf32>
      %23 = arith.addf %19, %22 : vector<8x32xf32>
      %c0_24 = arith.constant 0 : index
      %c0_25 = arith.constant 0 : index
      %24 = vector.load %arg8[%c0_24, %c0_25] : memref<1x32xf32, #tpu.memory_space<vmem>>, vector<1x32xf32>
      %25 = vector.broadcast %24 : vector<1x32xf32> to vector<8x32xf32>
      %26 = arith.addf %23, %25 : vector<8x32xf32>
      %c0_26 = arith.constant 0 : index
      %c0_27 = arith.constant 0 : index
      %27 = vector.load %arg9[%c0_26, %c0_27] : memref<1x32xf32, #tpu.memory_space<vmem>>, vector<1x32xf32>
      %c0_28 = arith.constant 0 : index
      %c0_29 = arith.constant 0 : index
      %28 = vector.load %arg7[%c0_28, %c0_29] : memref<8x32xf32, #tpu.memory_space<vmem>>, vector<8x32xf32>
      %29 = vector.broadcast %27 : vector<1x32xf32> to vector<8x32xf32>
      %30 = arith.mulf %29, %28 : vector<8x32xf32>
      %31 = arith.addf %26, %30 : vector<8x32xf32>
      %c0_30 = arith.constant 0 : index
      %c0_31 = arith.constant 0 : index
      %32 = vector.load %arg10[%c0_30, %c0_31] : memref<8x32xf32, #tpu.memory_space<vmem>>, vector<8x32xf32>
      tpu.vector_store %arg10[%c0_30, %c0_31], %31 {strides = array<i32>} : memref<8x32xf32, #tpu.memory_space<vmem>>, vector<8x32xf32>,
    } else {
    }
    return
  }
  func.func @transform_0(%arg0: i32, %arg1: i32, %arg2: i32) -> (i32, i32) {
    %c0_i32 = arith.constant 0 : i32
    return %arg0, %arg2 : i32, i32
  }
  func.func @transform_1(%arg0: i32, %arg1: i32, %arg2: i32) -> (i32, i32) {
    %c0_i32 = arith.constant 0 : i32
    return %arg2, %arg1 : i32, i32
  }
  func.func @transform_2(%arg0: i32, %arg1: i32, %arg2: i32) -> (i32, i32) {
    %c0_i32 = arith.constant 0 : i32
    return %arg2, %arg1 : i32, i32
  }
  func.func @transform_3(%arg0: i32, %arg1: i32, %arg2: i32) -> (i32, i32) {
    %c0_i32 = arith.constant 0 : i32
    return %arg0, %arg1 : i32, i32
  }
  func.func @transform_4(%arg0: i32, %arg1: i32, %arg2: i32) -> (i32, i32) {
    %c0_i32 = arith.constant 0 : i32
    return %arg0, %arg1 : i32, i32
  }
  func.func @transform_5(%arg0: i32, %arg1: i32, %arg2: i32) -> (i32, i32) {
    %c0_i32 = arith.constant 0 : i32
    %c0_i32_0 = arith.constant 0 : i32
    return %c0_i32, %arg1 : i32, i32
  }
  func.func @transform_6(%arg0: i32, %arg1: i32, %arg2: i32) -> (i32, i32) {
    %c0_i32 = arith.constant 0 : i32
    %c0_i32_0 = arith.constant 0 : i32
    return %c0_i32, %arg1 : i32, i32
  }
  func.func @transform_7(%arg0: i32, %arg1: i32, %arg2: i32) -> (i32, i32) {
    %c0_i32 = arith.constant 0 : i32
    return %arg0, %arg1 : i32, i32
  }
}

module attributes {stable_mosaic.version = 11 : i64} {
  func.func @_kl_mc_kernel(%arg0: i32, %arg1: memref<32x32xf32, #tpu.memory_space<vmem>>, %arg2: memref<32x32xf32, #tpu.memory_space<vmem>>, %arg3: memref<1x32xf32, #tpu.memory_space<vmem>>, %arg4: memref<1x32xf32, #tpu.memory_space<vmem>>, %arg5: memref<1x32x32xf32, #tpu.memory_space<vmem>>, %arg6: memref<1x1x32xf32, #tpu.memory_space<vmem>>, %arg7: memref<1x1xf32, #tpu.memory_space<vmem>>, %arg8: memref<32x32xf32, #tpu.memory_space<vmem>>, %arg9: memref<1x32xf32, #tpu.memory_space<vmem>>) attributes {dimension_semantics = [#tpu.dimension_semantics<arbitrary>], iteration_bounds = array<i64: 10>, scalar_prefetch = 0 : i64, scratch_operands = 2 : i64, tpu.core_type = #tpu.core_type<tc>, window_params = [{pipeline_mode = #tpu.pipeline_mode<synchronous>, transform_indices = @transform_0, window_bounds = array<i64: 32, 32>}, {pipeline_mode = #tpu.pipeline_mode<synchronous>, transform_indices = @transform_1, window_bounds = array<i64: 32, 32>}, {pipeline_mode = #tpu.pipeline_mode<synchronous>, transform_indices = @transform_2, window_bounds = array<i64: 1, 32>}, {pipeline_mode = #tpu.pipeline_mode<synchronous>, transform_indices = @transform_3, window_bounds = array<i64: 1, 32>}, {transform_indices = @transform_4, window_bounds = array<i64: 1, 32, 32>}, {transform_indices = @transform_5, window_bounds = array<i64: 1, 1, 32>}, {pipeline_mode = #tpu.pipeline_mode<synchronous>, transform_indices = @transform_6, window_bounds = array<i64: 1, 1>}]} {
    %c0_i32 = arith.constant 0 : i32
    %0 = arith.cmpi eq, %arg0, %c0_i32 : i32
    %1 = arith.extui %0 : i1 to i32
    %c0_i32_0 = arith.constant 0 : i32
    %2 = arith.cmpi ne, %1, %c0_i32_0 : i32
    scf.if %2 {
      %c0_21 = arith.constant 0 : index
      %c0_22 = arith.constant 0 : index
      %38 = vector.load %arg2[%c0_21, %c0_22] : memref<32x32xf32, #tpu.memory_space<vmem>>, vector<32x32xf32>
      %cst_23 = arith.constant 1.000000e+00 : f32
      %39 = vector.broadcast %cst_23 : f32 to vector<32x32xf32>
      %40 = arith.addf %39, %38 : vector<32x32xf32>
      %cst_24 = arith.constant 5.000000e-01 : f32
      %41 = vector.broadcast %cst_24 : f32 to vector<32x32xf32>
      %42 = arith.mulf %41, %40 : vector<32x32xf32>
      %c0_25 = arith.constant 0 : index
      %c0_26 = arith.constant 0 : index
      %43 = vector.load %arg4[%c0_25, %c0_26] : memref<1x32xf32, #tpu.memory_space<vmem>>, vector<1x32xf32>
      %cst_27 = arith.constant 1.000000e+00 : f32
      %44 = vector.broadcast %cst_27 : f32 to vector<1x32xf32>
      %45 = arith.addf %44, %43 : vector<1x32xf32>
      %cst_28 = arith.constant 5.000000e-01 : f32
      %46 = vector.broadcast %cst_28 : f32 to vector<1x32xf32>
      %47 = arith.mulf %46, %45 : vector<1x32xf32>
      %48 = math.exp %42 : vector<32x32xf32>
      %c0_29 = arith.constant 0 : index
      %c0_30 = arith.constant 0 : index
      %49 = vector.load %arg8[%c0_29, %c0_30] : memref<32x32xf32, #tpu.memory_space<vmem>>, vector<32x32xf32>
      tpu.vector_store %arg8[%c0_29, %c0_30], %48 {strides = array<i32>} : memref<32x32xf32, #tpu.memory_space<vmem>>, vector<32x32xf32>,
      %50 = math.exp %47 : vector<1x32xf32>
      %c0_31 = arith.constant 0 : index
      %c0_32 = arith.constant 0 : index
      %51 = vector.load %arg9[%c0_31, %c0_32] : memref<1x32xf32, #tpu.memory_space<vmem>>, vector<1x32xf32>
      tpu.vector_store %arg9[%c0_31, %c0_32], %50 {strides = array<i32>} : memref<1x32xf32, #tpu.memory_space<vmem>>, vector<1x32xf32>,
      %52 = vector.shape_cast %42 : vector<32x32xf32> to vector<1x32x32xf32>
      %cst_33 = arith.constant dense<0.000000e+00> : vector<1xf32>
      %53 = vector.multi_reduction <add>, %52, %cst_33 [1, 2] : vector<1x32x32xf32> to vector<1xf32>
      %54 = vector.shape_cast %53 : vector<1xf32> to vector<1x1x1xf32>
      %55 = vector.extract %54[0, 0, 0] : f32 from vector<1x1x1xf32>
      %56 = vector.shape_cast %47 : vector<1x32xf32> to vector<1x1x32xf32>
      %cst_34 = arith.constant dense<0.000000e+00> : vector<1xf32>
      %57 = vector.multi_reduction <add>, %56, %cst_34 [1, 2] : vector<1x1x32xf32> to vector<1xf32>
      %58 = vector.shape_cast %57 : vector<1xf32> to vector<1x1x1xf32>
      %59 = vector.extract %58[0, 0, 0] : f32 from vector<1x1x1xf32>
      %60 = arith.addf %55, %59 : f32
      %cst_35 = arith.constant 0.000000e+00 : f32
      %61 = arith.subf %cst_35, %60 : f32
      %cst_36 = arith.constant 1.000000e+01 : f32
      %62 = arith.mulf %61, %cst_36 : f32
      %63 = vector.broadcast %62 : f32 to vector<1x1xf32>
      %c0_37 = arith.constant 0 : index
      %c0_38 = arith.constant 0 : index
      %64 = vector.load %arg7[%c0_37, %c0_38] : memref<1x1xf32, #tpu.memory_space<vmem>>, vector<1x1xf32>
      tpu.vector_store %arg7[%c0_37, %c0_38], %63 {strides = array<i32>} : memref<1x1xf32, #tpu.memory_space<vmem>>, vector<1x1xf32>,
    } else {
    }
    %c0 = arith.constant 0 : index
    %c0_1 = arith.constant 0 : index
    %c0_2 = arith.constant 0 : index
    %3 = vector.load %arg5[%c0, %c0_1, %c0_2] : memref<1x32x32xf32, #tpu.memory_space<vmem>>, vector<1x32x32xf32>
    %4 = vector.shape_cast %3 : vector<1x32x32xf32> to vector<32x32xf32>
    %c0_3 = arith.constant 0 : index
    %c0_4 = arith.constant 0 : index
    %c0_5 = arith.constant 0 : index
    %5 = vector.load %arg6[%c0_3, %c0_4, %c0_5] : memref<1x1x32xf32, #tpu.memory_space<vmem>>, vector<1x1x32xf32>
    %6 = vector.shape_cast %5 : vector<1x1x32xf32> to vector<1x32xf32>
    %c0_6 = arith.constant 0 : index
    %c0_7 = arith.constant 0 : index
    %7 = vector.load %arg1[%c0_6, %c0_7] : memref<32x32xf32, #tpu.memory_space<vmem>>, vector<32x32xf32>
    %c0_8 = arith.constant 0 : index
    %c0_9 = arith.constant 0 : index
    %8 = vector.load %arg8[%c0_8, %c0_9] : memref<32x32xf32, #tpu.memory_space<vmem>>, vector<32x32xf32>
    %9 = arith.mulf %8, %4 : vector<32x32xf32>
    %10 = arith.addf %7, %9 : vector<32x32xf32>
    %c0_10 = arith.constant 0 : index
    %c0_11 = arith.constant 0 : index
    %11 = vector.load %arg3[%c0_10, %c0_11] : memref<1x32xf32, #tpu.memory_space<vmem>>, vector<1x32xf32>
    %c0_12 = arith.constant 0 : index
    %c0_13 = arith.constant 0 : index
    %12 = vector.load %arg9[%c0_12, %c0_13] : memref<1x32xf32, #tpu.memory_space<vmem>>, vector<1x32xf32>
    %13 = arith.mulf %12, %6 : vector<1x32xf32>
    %14 = arith.addf %11, %13 : vector<1x32xf32>
    %15 = arith.mulf %10, %10 : vector<32x32xf32>
    %16 = arith.mulf %4, %4 : vector<32x32xf32>
    %17 = arith.subf %15, %16 : vector<32x32xf32>
    %18 = vector.shape_cast %17 : vector<32x32xf32> to vector<1x32x32xf32>
    %cst = arith.constant dense<0.000000e+00> : vector<1xf32>
    %19 = vector.multi_reduction <add>, %18, %cst [1, 2] : vector<1x32x32xf32> to vector<1xf32>
    %20 = vector.shape_cast %19 : vector<1xf32> to vector<1x1x1xf32>
    %21 = vector.extract %20[0, 0, 0] : f32 from vector<1x1x1xf32>
    %22 = arith.mulf %14, %14 : vector<1x32xf32>
    %23 = arith.mulf %6, %6 : vector<1x32xf32>
    %24 = arith.subf %22, %23 : vector<1x32xf32>
    %25 = vector.shape_cast %24 : vector<1x32xf32> to vector<1x1x32xf32>
    %cst_14 = arith.constant dense<0.000000e+00> : vector<1xf32>
    %26 = vector.multi_reduction <add>, %25, %cst_14 [1, 2] : vector<1x1x32xf32> to vector<1xf32>
    %27 = vector.shape_cast %26 : vector<1xf32> to vector<1x1x1xf32>
    %28 = vector.extract %27[0, 0, 0] : f32 from vector<1x1x1xf32>
    %29 = arith.addf %21, %28 : f32
    %cst_15 = arith.constant 5.000000e-01 : f32
    %30 = arith.mulf %cst_15, %29 : f32
    %c0_16 = arith.constant 0 : index
    %c0_17 = arith.constant 0 : index
    %31 = vector.load %arg7[%c0_16, %c0_17] : memref<1x1xf32, #tpu.memory_space<vmem>>, vector<1x1xf32>
    %32 = vector.broadcast %30 : f32 to vector<1x1xf32>
    %33 = arith.addf %31, %32 : vector<1x1xf32>
    %c0_18 = arith.constant 0 : index
    %c0_19 = arith.constant 0 : index
    %34 = vector.load %arg7[%c0_18, %c0_19] : memref<1x1xf32, #tpu.memory_space<vmem>>, vector<1x1xf32>
    tpu.vector_store %arg7[%c0_18, %c0_19], %33 {strides = array<i32>} : memref<1x1xf32, #tpu.memory_space<vmem>>, vector<1x1xf32>,
    %c9_i32 = arith.constant 9 : i32
    %35 = arith.cmpi eq, %arg0, %c9_i32 : i32
    %36 = arith.extui %35 : i1 to i32
    %c0_i32_20 = arith.constant 0 : i32
    %37 = arith.cmpi ne, %36, %c0_i32_20 : i32
    scf.if %37 {
      %c0_21 = arith.constant 0 : index
      %c0_22 = arith.constant 0 : index
      %38 = vector.load %arg7[%c0_21, %c0_22] : memref<1x1xf32, #tpu.memory_space<vmem>>, vector<1x1xf32>
      %cst_23 = arith.constant 1.000000e-01 : f32
      %39 = vector.broadcast %cst_23 : f32 to vector<1x1xf32>
      %40 = arith.mulf %38, %39 : vector<1x1xf32>
      %c0_24 = arith.constant 0 : index
      %c0_25 = arith.constant 0 : index
      %41 = vector.load %arg7[%c0_24, %c0_25] : memref<1x1xf32, #tpu.memory_space<vmem>>, vector<1x1xf32>
      tpu.vector_store %arg7[%c0_24, %c0_25], %40 {strides = array<i32>} : memref<1x1xf32, #tpu.memory_space<vmem>>, vector<1x1xf32>,
    } else {
    }
    return
  }
  func.func @transform_0(%arg0: i32) -> (i32, i32) {
    %c0_i32 = arith.constant 0 : i32
    %c0_i32_0 = arith.constant 0 : i32
    %c0_i32_1 = arith.constant 0 : i32
    return %c0_i32, %c0_i32_0 : i32, i32
  }
  func.func @transform_1(%arg0: i32) -> (i32, i32) {
    %c0_i32 = arith.constant 0 : i32
    %c0_i32_0 = arith.constant 0 : i32
    %c0_i32_1 = arith.constant 0 : i32
    return %c0_i32, %c0_i32_0 : i32, i32
  }
  func.func @transform_2(%arg0: i32) -> (i32, i32) {
    %c0_i32 = arith.constant 0 : i32
    %c0_i32_0 = arith.constant 0 : i32
    %c0_i32_1 = arith.constant 0 : i32
    return %c0_i32, %c0_i32_0 : i32, i32
  }
  func.func @transform_3(%arg0: i32) -> (i32, i32) {
    %c0_i32 = arith.constant 0 : i32
    %c0_i32_0 = arith.constant 0 : i32
    %c0_i32_1 = arith.constant 0 : i32
    return %c0_i32, %c0_i32_0 : i32, i32
  }
  func.func @transform_4(%arg0: i32) -> (i32, i32, i32) {
    %c0_i32 = arith.constant 0 : i32
    %c0_i32_0 = arith.constant 0 : i32
    %c0_i32_1 = arith.constant 0 : i32
    return %arg0, %c0_i32, %c0_i32_0 : i32, i32, i32
  }
  func.func @transform_5(%arg0: i32) -> (i32, i32, i32) {
    %c0_i32 = arith.constant 0 : i32
    %c0_i32_0 = arith.constant 0 : i32
    %c0_i32_1 = arith.constant 0 : i32
    return %arg0, %c0_i32, %c0_i32_0 : i32, i32, i32
  }
  func.func @transform_6(%arg0: i32) -> (i32, i32) {
    %c0_i32 = arith.constant 0 : i32
    %c0_i32_0 = arith.constant 0 : i32
    %c0_i32_1 = arith.constant 0 : i32
    return %c0_i32, %c0_i32_0 : i32, i32
  }
}

</mosaic_0001>

<bundles_post_ra>
// kernel: stochastic_linear_forward.2
= control target key start
LH: loop header
LB: loop body
LE: loop exit
PB: predicated region body
PF: predicated region fallthrough
CT: control target
= control target key end

     0   :  { %12 = vsyncpa [#allocation5], 0  ;;  %s553_s0 = inlined_call_operand.hbm [shape: f32[8,32], index: 0, kind: input, shape index: {}]   ;;  %s554_s1 = inlined_call_operand.vmem [shape: f32[32,32], index: 1, kind: input, shape index: {}]   ;;  %s555_s2 = inlined_call_operand.vmem [shape: f32[32,32], index: 2, kind: input, shape index: {}]   ;;  %s556_s3 = inlined_call_operand.hbm [shape: f32[8,32], index: 3, kind: input, shape index: {}]   ;;  %s557_s4 = inlined_call_operand.hbm [shape: f32[8,32], index: 4, kind: input, shape index: {}]   ;;  %s558_s5 = inlined_call_operand.vmem [shape: f32[1,32], index: 5, kind: input, shape index: {}]   ;;  %s559_s6 = inlined_call_operand.vmem [shape: f32[1,32], index: 6, kind: input, shape index: {}]   ;;  %s560_s7 = inlined_call_operand.hbm [shape: f32[8,32], index: 7, kind: output, shape index: {}]  }
   0x1   :  { %13 = vsyncpa [#allocation8], 0 }
   0x2   :  { %14 = vsyncpa [#allocation6], 0  ;;  %s421_s24 = smov [#allocation7]   ;;  %s422_s26 = smov [#allocation4]  }
   0x3   :  { %s35_s25 = sshll.u32 %s421_s24, 4  ;;  %s21_s27 = sshll.u32 %s422_s26, 4  ;;  %s36_s25 = int_to_ptr.vmem [resolvable:$true] %s35_s25  ;;  %s22_s27 = int_to_ptr.vmem [resolvable:$true] %s21_s27 }
   0x4   :  { %s327_s30 = scalar_lea.hbm %s556_s3, 128 }
   0x5   :  { %p328_p0 = scmp.ne.s32.totalorder %s556_s3, %s327_s30  ;;  %p331_p1 = scmp.lt.u32.totalorder %s327_s30, %s556_s3 }
   0x7   :  { %p333_p2 = pnand %p331_p1, %p328_p0 }
   0x9   :  { %336 = shalt.err (!%p333_p2)
}
   0xa   :  { %s337_s12 = scalar_lea.vmem %s36_s25, 128  ;;  %p342_p4 = scmp.lt.s32.totalorder %s36_s25, %s36_s25 }
   0xb   :  { %p338_p3 = scmp.ne.s32.totalorder %s36_s25, %s337_s12  ;;  %p343_p5 = scmp.lt.s32.totalorder %s337_s12, %s337_s12 }
   0xd   :  { %p344_p6 = por %p343_p5, %p342_p4 }
   0xf   :  { %p345_p7 = pnand %p344_p6, %p338_p3 }
  0x11   :  { %348 = shalt.err (!%p345_p7)
}
  0x12   :  { %38 = dma.hbm_to_vmem [thread:$0]  %s556_s3, 128, %s36_s25, [#allocation8]  }
  0x13   :  { %s349_s17 = scalar_lea.hbm %s553_s0, 128 }
  0x14   :  { %p350_p8 = scmp.ne.s32.totalorder %s553_s0, %s349_s17  ;;  %p353_p9 = scmp.lt.u32.totalorder %s349_s17, %s553_s0 }
  0x16   :  { %p355_p10 = pnand %p353_p9, %p350_p8 }
  0x18   :  { %358 = shalt.err (!%p355_p10)
}
  0x19   :  { %s359_s22 = scalar_lea.vmem %s22_s27, 128  ;;  %p364_p12 = scmp.lt.s32.totalorder %s22_s27, %s22_s27 }
  0x1a   :  { %p360_p11 = scmp.ne.s32.totalorder %s22_s27, %s359_s22  ;;  %p365_p13 = scmp.lt.s32.totalorder %s359_s22, %s359_s22 }
  0x1c   :  { %p366_p0 = por %p365_p13, %p364_p12 }
  0x1e   :  { %p367_p1 = pnand %p366_p0, %p360_p11 }
  0x20   :  { %370 = shalt.err (!%p367_p1)
}
  0x21   :  { %24 = dma.hbm_to_vmem [thread:$0]  %s553_s0, 128, %s22_s27, [#allocation5]  }
  0x22   :  { %s423_s24 = smov [#allocation9]   ;;  %s371_s29 = scalar_lea.hbm %s557_s4, 128 }
  0x23   :  { %s45_s25 = sshll.u32 %s423_s24, 4  ;;  %p372_p2 = scmp.ne.s32.totalorder %s557_s4, %s371_s29  ;;  %s46_s25 = int_to_ptr.vmem [resolvable:$true] %s45_s25 }
  0x24   :  { %p375_p3 = scmp.lt.u32.totalorder %s371_s29, %s557_s4 }
  0x26   :  { %p377_p4 = pnand %p375_p3, %p372_p2 }
  0x28   :  { %380 = shalt.err (!%p377_p4)
}
  0x29   :  { %s381_s11 = scalar_lea.vmem %s46_s25, 128  ;;  %p386_p6 = scmp.lt.s32.totalorder %s46_s25, %s46_s25 }
  0x2a   :  { %p382_p5 = scmp.ne.s32.totalorder %s46_s25, %s381_s11  ;;  %p387_p7 = scmp.lt.s32.totalorder %s381_s11, %s381_s11 }
  0x2c   :  { %p388_p8 = por %p387_p7, %p386_p6 }
  0x2e   :  { %p389_p9 = pnand %p388_p8, %p382_p5 }
  0x30   :  { %392 = shalt.err (!%p389_p9)
}
  0x31   :  { %48 = dma.hbm_to_vmem [thread:$0]  %s557_s4, 128, %s46_s25, [#allocation8]  }
  0x32   :  { %415 = dma.done.wait [#allocation5], 128  }
  0x33   :  { %416 = vsyncadd [#allocation5], 4294967168 }
  0x34   :  { %417 = dma.done.wait [#allocation8], 256  }
  0x35   :  { %418 = vsyncadd [#allocation8], 4294967040  ;;  %vm66_vm0 = vcmask 261120   ;;  %v424_v0 = vmov 0.0|0.0   ;;  %v425_v1 = vmov 0.0   ;;  %vm426_vm1 = vmmov 0  }
  0x36   :  { %308 = vmatprep.subr.bf16.mxu0 %v424_v0  ;;  %314 = vmatprep.subr.bf16.mxu1 %v424_v0  ;;  %67 = vst.msk [vmem:[#allocation2] sm:$0xff] %vm66_vm0, %v425_v1  ;;  %68 = vst.msk [vmem:[#allocation3] sm:$0xff] %vm66_vm0, %v425_v1  ;;  %v71_v2 = vld [vmem:[%s554_s1] sm:$0xff]  ;;  %v72_v3 = vld [vmem:[%s554_s1 + $0x8] sm:$0xff]  ;;  %s427_s29 = smov [#allocation10]  }
  0x37   :  { %294 = vmatprep.mubr.msk.f32.mxu0 %vm426_vm1, %v425_v1  ;;  %305 = vmatprep.mubr.msk.f32.mxu1 %vm426_vm1, %v425_v1  ;;  %v152_v4 = vld [vmem:[%s555_s2] sm:$0xff]  ;;  %v309_v5 = vpack.c.bf16 %v72_v3, %v71_v2  ;;  %v153_v6 = vld [vmem:[%s555_s2 + $0x8] sm:$0xff]  ;;  %v73_v7 = vld [vmem:[%s554_s1 + $0x10] sm:$0xff]  ;;  %s262_s30 = sshll.u32 %s427_s29, 4  ;;  %s263_s30 = int_to_ptr.vmem [resolvable:$true] %s262_s30 }
  0x38   :  { %v74_v8 = vld [vmem:[%s554_s1 + $0x18] sm:$0xff]  ;;  %v315_v9 = vpack.c.bf16 %v153_v6, %v152_v4  ;;  %v154_v10 = vld [vmem:[%s555_s2 + $0x10] sm:$0xff]  ;;  %v275_v27 = vld [vmem:[%s559_s6] ss:$0 sm:$0xff]  ;;  %s393_s8 = scalar_lea.vmem %s263_s30, 128  ;;  %p398_p11 = scmp.lt.s32.totalorder %s263_s30, %s263_s30 }
  0x39   :  { %v155_v11 = vld [vmem:[%s555_s2 + $0x18] sm:$0xff]  ;;  %310 = vmatpush3.bf16.msra.mxu0 %v309_v5  ;;  %v312_v12 = vpack.c.bf16 %v74_v8, %v73_v7  ;;  %v69_v14 = vld [vmem:[#allocation4] sm:$0xff]  ;;  %v246_v28 = vld [vmem:[#allocation9] sm:$0xff]  ;;  %p394_p10 = scmp.ne.s32.totalorder %s263_s30, %s393_s8  ;;  %p399_p12 = scmp.lt.s32.totalorder %s393_s8, %s393_s8 }
  0x3a   :  { %316 = vmatpush3.bf16.msra.mxu1 %v315_v9  ;;  %311 = vmatprep.subr.bf16.mxu0 %v424_v0  ;;  %v318_v13 = vpack.c.bf16 %v155_v11, %v154_v10  ;;  %v234_v23 = vld [vmem:[#allocation7] sm:$0xff]  ;;  %v274_v30 = vld [vmem:[%s558_s5] ss:$0 sm:$0xff]  ;;  %v253_v32 = vmul.f32 %v275_v27, %v246_v28 }
  0x3b   :  { %317 = vmatprep.subr.bf16.mxu1 %v424_v0  ;;  %p400_p13 = por %p399_p12, %p398_p11 }
  0x3d   :  { %313 = vmatpush3.bf16.msra.mxu0 %v312_v12  ;;  %v70_v15 = vld [vmem:[#allocation2] sm:$0xff]  ;;  %v151_v16 = vld [vmem:[#allocation3] sm:$0xff]  ;;  %p401_p0 = pnand %p400_p13, %p394_p10 }
  0x3e   :  { %319 = vmatpush3.bf16.msra.mxu1 %v318_v13 }
  0x40   :  { %295 = vmatmul.mubr.msk.f32.vlgmr.msra.gmra.mrb[0].mxu0 %vm66_vm0, %v69_v14 }
  0x41   :  { %306 = vmatmul.mubr.msk.f32.vlgmr.msra.gmra.mrb[0].mxu1 %vm66_vm0, %v69_v14 }
 0x113   :  { %v145_v17 = vpop.f32.mrb[0].mxu0 }
 0x114   :  { %v149_v18 = vadd.f32 %v145_v17, %v70_v15  ;;  %v222_v19 = vpop.f32.mrb[0].mxu1  ;;  %v296_v20 = vpop.f32.mrb[1].mxu0 }
 0x115   :  { %v226_v21 = vadd.f32 %v222_v19, %v151_v16  ;;  %v307_v22 = vpop.f32.mrb[1].mxu1 }
 0x116   :  { %150 = vst.msk [vmem:[#allocation2] sm:$0xff] %vm66_vm0, %v149_v18 }
 0x117   :  { %227 = vst.msk [vmem:[#allocation3] sm:$0xff] %vm66_vm0, %v226_v21 }
 0x11d   :  { %v231_v24 = vld [vmem:[#allocation2] sm:$0xff] }
 0x11e   :  { %v232_v25 = vadd.f32 1e-08, %v231_v24  ;;  %v233_v26 = vld [vmem:[#allocation3] sm:$0xff] }
 0x11f   :  { %v235_v29 = vmul.f32 %v234_v23, %v233_v26 }
 0x121   :  { %v236_v31 = vadd.f32 %v235_v29, %v232_v25 }
 0x123   :  { %v244_v33 = vadd.f32 %v274_v30, %v236_v31 }
 0x125   :  { %v254_v34 = vadd.f32 %v253_v32, %v244_v33 }
 0x127   :  { %255 = vst.msk [vmem:[#allocation10] sm:$0xff] %vm66_vm0, %v254_v34 }
 0x128   :  { %404 = shalt.err (!%p401_p0)
}
 0x129   :  { %s405_s5 = scalar_lea.hbm %s560_s7, 128 }
 0x12a   :  { %p406_p1 = scmp.ne.s32.totalorder %s560_s7, %s405_s5  ;;  %p409_p2 = scmp.lt.u32.totalorder %s405_s5, %s560_s7 }
 0x12c   :  { %p411_p3 = pnand %p409_p2, %p406_p1 }
 0x12e   :  { %414 = shalt.err (!%p411_p3)
}
 0x12f   :  { %265 = dma.vmem_to_hbm [thread:$0]  %s263_s30, 128, %s560_s7, [#allocation6]  }
 0x130   :  { %419 = dma.done.wait [#allocation6], 128  }
 0x131   :  { %420 = vsyncadd [#allocation6], 4294967168 }
 0x132   :  { %269 = vsyncpa [#allocation5], 1 }
 0x133   :  { %270 = vsyncpa [#allocation8], 1 }
 0x134   :  { %271 = vsyncpa [#allocation6], 1 }

// kernel: stochastic_linear_forward.3
= control target key start
LH: loop header
LB: loop body
LE: loop exit
PB: predicated region body
PF: predicated region fallthrough
CT: control target
= control target key end

     0   :  { %11 = vsyncpa [#allocation5], 0  ;;  %s881_s0 = inlined_call_operand.vmem [shape: f32[32,32], index: 0, kind: input, shape index: {}]   ;;  %s882_s1 = inlined_call_operand.hbm [shape: f32[32,32], index: 1, kind: input, shape index: {}]   ;;  %s883_s2 = inlined_call_operand.vmem [shape: f32[1,32], index: 2, kind: input, shape index: {}]   ;;  %s884_s3 = inlined_call_operand.hbm [shape: f32[1,32], index: 3, kind: input, shape index: {}]   ;;  %s885_s4 = inlined_call_operand.vmem [shape: f32[10,32,32], index: 4, kind: input, shape index: {}]   ;;  %s886_s5 = inlined_call_operand.vmem [shape: f32[10,1,32], index: 5, kind: input, shape index: {}]   ;;  %s887_s6 = inlined_call_operand.hbm [shape: f32[1,1], index: 6, kind: output, shape index: {}]  }
   0x1   :  { %12 = vsyncpa [#allocation8], 0 }
   0x2   :  { %13 = vsyncpa [#allocation6], 0  ;;  %s722_s21 = smov 0  }
   0x3 LB: > { %s728_s22 = sadd.s32 4294967295, %s680_s21   ;;  %p508_p0 = scmp.ge.s32.totalorder %s680_s21, 1  ;;  %s680_s21 = sphi %s722_s21, %s19_s21  }
   0x4   : > { %p181_p1 = scmp.lt.s32.totalorder %s680_s21, 11  ;;  %s682_s23 = smov [#allocation4]  }
   0x5   : > { %s196_s24 = sshll.u32 %s682_s23, 4  ;;  %p888_p4 = scmp.eq.s32.totalorder %s728_s22, 0  ;;  %s197_s24 = int_to_ptr.vmem [resolvable:$true] %s196_s24 }
   0x6   : > { %p733_p3 = pnand %p508_p0, %p181_p1  ;;  %s683_s26 = smov [#allocation7]  }
   0x7   : > { %s213_s27 = sshll.u32 %s683_s26, 4  ;;  %s580_s7 = scalar_lea.hbm %s882_s1, 512  ;;  %s746_s27 = int_to_ptr.vmem [resolvable:$true] %s213_s27 }
   0x8   : > { %s890_s25 = scalar_select %p733_p3, 1, 0 }
   0x9   : > { %p544_p5 = pneg %p733_p3  ;;  %p581_p7 = scmp.ne.s32.totalorder %s882_s1, %s580_s7 }
   0xa   : > { %p587_p11 = scmp.lt.u32.totalorder %s580_s7, %s882_s1 }
   0xb   : > { %p742_p6 = pnand %p888_p4, %p544_p5 }
   0xd   : > { %p582_p8 = pneg %p742_p6 }
   0xf   : > { %p583_p9 = pnand %p582_p8, %p581_p7 }
  0x11   : > { %p584_p10 = pneg %p583_p9 }
  0x13   : > { %p589_p12 = pnand %p587_p11, %p584_p10 }
  0x15   : > { %592 = shalt.err (!%p589_p12)
}
  0x16   : > { %s593_s12 = scalar_lea.vmem %s197_s24, 512  ;;  %p601_p5 = scmp.lt.s32.totalorder %s197_s24, %s197_s24 }
  0x17   : > { %p594_p13 = scmp.ne.s32.totalorder %s197_s24, %s593_s12  ;;  %p602_p2 = scmp.lt.s32.totalorder %s593_s12, %s593_s12 }
  0x19   : > { %p596_p0 = pnand %p594_p13, %p582_p8  ;;  %p603_p4 = por %p602_p2, %p601_p5 }
  0x1b   : > { %p597_p1 = pneg %p596_p0 }
  0x1d   : > { %p604_p3 = pnand %p603_p4, %p597_p1 }
  0x1f   : > { %607 = shalt.err (!%p604_p3)
}
  0x20   : > { %s684_s13 = smov 128   ;;  %s685_s14 = smov 8  }
  0x21   : > { %547 = dma.hbm_to_vmem [thread:$0]  (!%p742_p6), %s882_s1, 512, %s197_s24, [#allocation5], %s684_s13, %s684_s13, %s685_s14  }
  0x22   : > { %s608_s19 = scalar_lea.hbm %s884_s3, 16 }
  0x23   : > { %p609_p7 = scmp.ne.s32.totalorder %s884_s3, %s608_s19  ;;  %p615_p4 = scmp.lt.u32.totalorder %s608_s19, %s884_s3 }
  0x25   : > { %p611_p2 = pnand %p609_p7, %p582_p8 }
  0x27   : > { %p612_p3 = pneg %p611_p2 }
  0x29   : > { %p617_p9 = pnand %p615_p4, %p612_p3 }
  0x2b   : > { %620 = shalt.err (!%p617_p9)
}
  0x2c   : > { %s621_s24 = scalar_lea.vmem %s746_s27, 16  ;;  %s628_s30 = scalar_lea.vmem %s746_s27, 32 }
  0x2d   : > { %p622_p10 = scmp.ne.s32.totalorder %s746_s27, %s621_s24  ;;  %p629_p13 = scmp.lt.s32.totalorder %s746_s27, %s746_s27 }
  0x2e   : > { %p630_p0 = scmp.lt.s32.totalorder %s628_s30, %s621_s24 }
  0x2f   : > { %p624_p11 = pnand %p622_p10, %p582_p8 }
  0x30   : > { %p631_p1 = por %p630_p0, %p629_p13 }
  0x31   : > { %p625_p12 = pneg %p624_p11 }
  0x33   : > { %p632_p5 = pnand %p631_p1, %p625_p12 }
  0x35   : > { %635 = shalt.err (!%p632_p5)
}
  0x36   : > { %550 = dma.hbm_to_vmem [thread:$0]  (!%p742_p6), %s884_s3, 16, %s746_s27, [#allocation8]  }
  0x37   : > { %p892_p7 = scmp.ne.s32.totalorder %s890_s25, 0 }
  0x38   : > { %p893_p8 = scmp.eq.s32.totalorder (!%p892_p7), %s728_s22, 0 }
  0x39   : > { %240 = sbr.rel (%p892_p7) target bundleno = 570 (0x23a), region = 44 }
  0x40   : > { %667 = dma.done.wait (%p893_p8), [#allocation5], 512   ;;  %p894_p2 = pmov %p893_p8 }
  0x42   : > { %669 = vsyncadd (%p894_p2), [#allocation5], 4294966784  ;;  %p895_p3 = pmov %p894_p2 }
  0x43   : > { %p896_p4 = pmov %p894_p2 }
  0x44   : > { %671 = dma.done.wait (%p895_p3), [#allocation8], 16  }
  0x45   : > { %673 = vsyncadd (%p896_p4), [#allocation8], 4294967280  ;;  %p272_p9 = scmp.lt.s32.totalorder %s728_s22, 9  ;;  %p897_p6 = scmp.ne.s32.totalorder %s728_s22, 0 }
  0x46   : > { %v284_v0 = vld [vmem:[#allocation4] sm:$0xff] (!%p897_p6)  ;;  %v285_v1 = vld [vmem:[#allocation4 + $0x8] sm:$0xff] (!%p897_p6)  ;;  %v286_v2 = vld [vmem:[#allocation4 + $0x10] sm:$0xff] (!%p897_p6)  ;;  %vm307_vm0 = vcmask (!%p897_p6), 261120   ;;  %vm314_vm1 = vcmask (!%p897_p6), 253952   ;;  %vm346_vm2 = vcmask (!%p897_p6), 0  }
  0x47   : > { %s808_s28 = scalar_select %p272_p9, %s728_s22, 9 }
  0x48   : > { %283 = sbr.rel (%p897_p6) target bundleno = 300 (0x12c), region = 56  ;;  %v287_v3 = vld [vmem:[#allocation4 + $0x18] sm:$0xff] (!%p897_p6)  ;;  %v288_v4 = vadd.f32 (!%p897_p6), 1.0, %v284_v0  ;;  %v289_v5 = vadd.f32 (!%p897_p6), 1.0, %v285_v1  ;;  %v290_v6 = vadd.f32 (!%p897_p6), 1.0, %v286_v2 }
  0x49   : > { %s523_s25 = sshll.u32 %s808_s28, 5  ;;  %s279_s10 = scalar_lea.vmem %s886_s5, %s808_s28  ;;  %v296_v7 = vld [vmem:[#allocation7] sm:$0x1] (!%p897_p6)  ;;  %v291_v8 = vadd.f32 (!%p897_p6), 1.0, %v287_v3 }
  0x4a   : > { %s818_s13 = scalar_lea.vmem %s885_s4, %s523_s25  ;;  %v297_v9 = vadd.f32 (!%p897_p6), 1.0, %v296_v7  ;;  %v292_v10 = vmul.f32 (!%p897_p6), 0.5, %v288_v4  ;;  %v293_v11 = vmul.f32 (!%p897_p6), 0.5, %v289_v5  ;;  %v294_v12 = vmul.f32 (!%p897_p6), 0.5, %v290_v6 }
  0x4b   : > { %v295_v13 = vmul.f32 (!%p897_p6), 0.5, %v291_v8 }
  0x4c   : > { %v298_v14 = vmul.f32 (!%p897_p6), 0.5, %v297_v9  ;;  %v301_v15 = vmul.f32 (!%p897_p6), 1.442695, %v293_v11  ;;  %v303_v16 = vmul.f32 (!%p897_p6), 1.442695, %v294_v12  ;;  %v316_v17 = vsel (!%p897_p6), %vm307_vm0, %v292_v10, 0.0 }
  0x4d   : > { %v317_v18 = vsel (!%p897_p6), %vm307_vm0, %v293_v11, 0.0  ;;  %v305_v19 = vmul.f32 (!%p897_p6), 1.442695, %v295_v13  ;;  %v319_v21 = vsel (!%p897_p6), %vm307_vm0, %v294_v12, 0.0  ;;  %v321_v22 = vsel (!%p897_p6), %vm307_vm0, %v295_v13, 0.0 }
  0x4e   : > { %v318_v20 = vadd.f32 (!%p897_p6), %v317_v18, %v316_v17  ;;  %570 = vpow2.f32 (!%p897_p6), %v301_v15  ;;  %v299_v23 = vmul.f32 (!%p897_p6), 1.442695, %v292_v10  ;;  %v312_v24 = vmul.f32 (!%p897_p6), 1.442695, %v298_v14 }
  0x4f   : > { %572 = vpow2.f32 %v303_v16  ;;  %v332_v27 = vsel %vm314_vm1, %v298_v14, 0.0 }
  0x50   : > { %v320_v25 = vadd.f32 %v319_v21, %v318_v20  ;;  %574 = vpow2.f32 %v305_v19 }
  0x51   : > { %576 = vpow2.f32 %v299_v23 }
  0x52   : > { %v322_v26 = vadd.f32 %v321_v22, %v320_v25  ;;  %578 = vpow2.f32 %v312_v24 }
  0x54   : > { %323 = vadd.xlane.f32.xlu0 %v322_v26 }
  0x58   : > { %333 = vadd.xlane.f32.xlu0 %v332_v27  ;;  %v571_v28 = vpop.eup %570 }
  0x59   : > { %v573_v29 = vpop.eup %572  ;;  %309 = vst.msk [vmem:[#allocation2 + $0x8] sm:$0xff] %vm307_vm0, %v571_v28 }
  0x5a   : > { %v575_v30 = vpop.eup %574  ;;  %310 = vst.msk [vmem:[#allocation2 + $0x10] sm:$0xff] %vm307_vm0, %v573_v29 }
  0x5b   : > { %v577_v31 = vpop.eup %576  ;;  %311 = vst.msk [vmem:[#allocation2 + $0x18] sm:$0xff] %vm307_vm0, %v575_v30 }
  0x5c   : > { %v579_v32 = vpop.eup %578  ;;  %308 = vst.msk [vmem:[#allocation2] sm:$0xff] %vm307_vm0, %v577_v31 }
  0x5d   : > { %315 = vst.msk [vmem:[#allocation3] sm:$0x1] %vm314_vm1, %v579_v32 }
  0xe1   : > { %v324_v33 = vpop.xlane.xlu0 %323 }
  0xe2   : > { %v325_v34 = vrot.slane %v324_v33, 4 }
  0xe4   : > { %v326_v35 = vadd.f32 %v325_v34, %v324_v33 }
  0xe5   : > { %v334_v36 = vpop.xlane.xlu0 %333 }
  0xe6   : > { %v327_v37 = vrot.slane %v326_v35, 2  ;;  %v335_v38 = vrot.slane %v334_v36, 4 }
  0xe8   : > { %v336_v39 = vadd.f32 %v335_v38, %v334_v36  ;;  %v328_v40 = vadd.f32 %v327_v37, %v326_v35 }
  0xea   : > { %v337_v41 = vrot.slane %v336_v39, 2  ;;  %v329_v42 = vrot.slane %v328_v40, 1 }
  0xec   : > { %v338_v43 = vadd.f32 %v337_v41, %v336_v39  ;;  %v330_v44 = vadd.f32 %v329_v42, %v328_v40 }
  0xee   : > { %524 = vpush %v330_v44  ;;  %v339_v45 = vrot.slane %v338_v43, 1 }
  0xf0   : > { %v340_v46 = vadd.f32 %v339_v45, %v338_v43 }
  0xf2   : > { %526 = vpush %v340_v46 }
 0x11f   : > { %s525_s14 = spop %524 }
 0x123   : > { %s527_s15 = spop %526 }
 0x124   : > { %s342_s16 = sadd.f32 %s527_s15, %s525_s14 }
 0x126   : > { %s343_s17 = ssub.f32 0.0, %s342_s16 }
 0x128   : > { %s344_s18 = smul.f32 10.0, %s343_s17 }
 0x12a   : > { %v345_v47 = vstv %s344_s18 }
 0x12b   : > { %347 = vst.msk [vmem:[#allocation9] sm:$0x1] %vm346_vm2, %v345_v47 }
 0x12c PF: > { %v348_v48 = vld [vmem:[%s818_s13] sm:$0xff]  ;;  %v349_v49 = vld [vmem:[%s818_s13 + $0x8] sm:$0xff]  ;;  %v350_v50 = vld [vmem:[%s818_s13 + $0x10] sm:$0xff]  ;;  %vm385_vm3 = vcmask 261120   ;;  %vm405_vm4 = vcmask 253952   ;;  %vm421_vm5 = vcmask 0  }
 0x12d   : > { %v351_v51 = vld [vmem:[%s818_s13 + $0x18] sm:$0xff]  ;;  %v353_v52 = vld [vmem:[%s881_s0] sm:$0xff]  ;;  %v354_v53 = vld [vmem:[%s881_s0 + $0x8] sm:$0xff]  ;;  %v377_v0 = vmul.f32 %v348_v48, %v348_v48  ;;  %v378_v4 = vmul.f32 %v349_v49, %v349_v49  ;;  %v379_v5 = vmul.f32 %v350_v50, %v350_v50  ;;  %p518_p10 = scmp.ne.s32.totalorder %s728_s22, 9 }
 0x12e   : > { %v355_v54 = vld [vmem:[%s881_s0 + $0x10] sm:$0xff]  ;;  %v356_v55 = vld [vmem:[%s881_s0 + $0x18] sm:$0xff]  ;;  %v357_v56 = vld [vmem:[#allocation2] sm:$0xff]  ;;  %v380_v11 = vmul.f32 %v351_v51, %v351_v51 }
 0x12f   : > { %v358_v57 = vld [vmem:[#allocation2 + $0x8] sm:$0xff]  ;;  %v359_v58 = vld [vmem:[#allocation2 + $0x10] sm:$0xff]  ;;  %v360_v59 = vld [vmem:[#allocation2 + $0x18] sm:$0xff]  ;;  %v361_v60 = vmul.f32 %v357_v56, %v348_v48 }
 0x130   : > { %v362_v61 = vmul.f32 %v358_v57, %v349_v49  ;;  %v363_v62 = vmul.f32 %v359_v58, %v350_v50  ;;  %v364_v63 = vmul.f32 %v360_v59, %v351_v51  ;;  %v352_v1 = vld [vmem:[%s279_s10] sm:$0x1] }
 0x131   : > { %v370_v2 = vld [vmem:[#allocation3] sm:$0x1]  ;;  %v365_v3 = vadd.f32 %v361_v60, %v353_v52  ;;  %v403_v25 = vmul.f32 %v352_v1, %v352_v1 }
 0x132   : > { %v369_v6 = vld [vmem:[%s883_s2] sm:$0x1]  ;;  %v371_v7 = vmul.f32 %v370_v2, %v352_v1  ;;  %v366_v8 = vadd.f32 %v362_v61, %v354_v53  ;;  %v367_v9 = vadd.f32 %v363_v62, %v355_v54  ;;  %v368_v10 = vadd.f32 %v364_v63, %v356_v55  ;;  %v418_v46 = vld [vmem:[#allocation9] sm:$0x1] }
 0x133   : > { %v373_v12 = vmul.f32 %v365_v3, %v365_v3 }
 0x134   : > { %v374_v13 = vmul.f32 %v366_v8, %v366_v8  ;;  %v375_v14 = vmul.f32 %v367_v9, %v367_v9  ;;  %v376_v15 = vmul.f32 %v368_v10, %v368_v10  ;;  %v372_v16 = vadd.f32 %v371_v7, %v369_v6 }
 0x135   : > { %v381_v17 = vsub.f32 %v373_v12, %v377_v0 }
 0x136   : > { %v382_v18 = vsub.f32 %v374_v13, %v378_v4  ;;  %v383_v19 = vsub.f32 %v375_v14, %v379_v5  ;;  %v384_v20 = vsub.f32 %v376_v15, %v380_v11  ;;  %v402_v24 = vmul.f32 %v372_v16, %v372_v16 }
 0x137   : > { %v386_v21 = vsel %vm385_vm3, %v381_v17, 0.0 }
 0x138   : > { %v387_v22 = vsel %vm385_vm3, %v382_v18, 0.0  ;;  %v389_v23 = vsel %vm385_vm3, %v383_v19, 0.0  ;;  %v391_v27 = vsel %vm385_vm3, %v384_v20, 0.0  ;;  %v404_v29 = vsub.f32 %v402_v24, %v403_v25 }
 0x139   : > { %v388_v26 = vadd.f32 %v387_v22, %v386_v21 }
 0x13a   : > { %v406_v31 = vsel %vm405_vm4, %v404_v29, 0.0 }
 0x13b   : > { %v390_v28 = vadd.f32 %v389_v23, %v388_v26 }
 0x13d   : > { %v392_v30 = vadd.f32 %v391_v27, %v390_v28 }
 0x13f   : > { %393 = vadd.xlane.f32.xlu0 %v392_v30 }
 0x143   : > { %407 = vadd.xlane.f32.xlu0 %v406_v31 }
 0x1cc   : > { %v394_v32 = vpop.xlane.xlu0 %393 }
 0x1cd   : > { %v395_v33 = vrot.slane %v394_v32, 4 }
 0x1cf   : > { %v396_v34 = vadd.f32 %v395_v33, %v394_v32 }
 0x1d0   : > { %v408_v35 = vpop.xlane.xlu0 %407 }
 0x1d1   : > { %v397_v36 = vrot.slane %v396_v34, 2  ;;  %v409_v37 = vrot.slane %v408_v35, 4 }
 0x1d3   : > { %v410_v38 = vadd.f32 %v409_v37, %v408_v35  ;;  %v398_v39 = vadd.f32 %v397_v36, %v396_v34 }
 0x1d5   : > { %v411_v40 = vrot.slane %v410_v38, 2  ;;  %v399_v41 = vrot.slane %v398_v39, 1 }
 0x1d7   : > { %v412_v42 = vadd.f32 %v411_v40, %v410_v38  ;;  %v400_v43 = vadd.f32 %v399_v41, %v398_v39 }
 0x1d9   : > { %528 = vpush %v400_v43  ;;  %v413_v44 = vrot.slane %v412_v42, 1 }
 0x1db   : > { %v414_v45 = vadd.f32 %v413_v44, %v412_v42 }
 0x1dd   : > { %530 = vpush %v414_v45 }
 0x20a   : > { %s529_s28 = spop %528 }
 0x20e   : > { %s531_s10 = spop %530 }
 0x20f   : > { %s416_s11 = sadd.f32 %s531_s10, %s529_s28 }
 0x210   : > { %426 = sbr.rel (%p518_p10) target bundleno = 545 (0x221), region = 60 }
 0x211   : > { %s417_s12 = smul.f32 0.5, %s416_s11 }
 0x213   : > { %v419_v47 = vstv %s417_s12 }
 0x214   : > { %v420_v48 = vadd.f32 %v419_v47, %v418_v46 }
 0x216   : > { %422 = vst.msk [vmem:[#allocation9] sm:$0x1] %vm421_vm5, %v420_v48 }
 0x21d   : > { %v427_v49 = vld [vmem:[#allocation9] sm:$0x1] }
 0x21e   : > { %v428_v50 = vmul.f32 0.1, %v427_v49 }
 0x220   : > { %429 = vst.msk [vmem:[#allocation9] sm:$0x1] %vm421_vm5, %v428_v50 }
 0x221 PF: > { %p555_p11 = scmp.eq.s32.totalorder %s728_s22, 9  ;;  %s686_s13 = smov [#allocation9]  }
 0x222   : > { %s437_s14 = sshll.u32 %s686_s13, 4  ;;  %s438_s14 = int_to_ptr.vmem [resolvable:$true] %s437_s14 }
 0x223   : > { %s636_s15 = scalar_lea.vmem %s438_s14, 16  ;;  %s642_s16 = scalar_lea.vmem %s438_s14, 32 }
 0x224   : > { %p637_p12 = scmp.ne.s32.totalorder %s438_s14, %s636_s15  ;;  %p643_p1 = scmp.lt.s32.totalorder %s438_s14, %s438_s14 }
 0x225   : > { %p644_p5 = scmp.lt.s32.totalorder %s642_s16, %s636_s15 }
 0x226   : > { %p638_p13 = pnand %p637_p12, %p555_p11 }
 0x227   : > { %p645_p7 = por %p644_p5, %p643_p1 }
 0x228   : > { %p639_p0 = pneg %p638_p13 }
 0x22a   : > { %p646_p8 = pnand %p645_p7, %p639_p0 }
 0x22c   : > { %649 = shalt.err (!%p646_p8)
}
 0x22d   : > { %s650_s19 = scalar_lea.hbm %s887_s6, 16 }
 0x22e   : > { %p651_p2 = scmp.ne.s32.totalorder %s887_s6, %s650_s19  ;;  %p656_p9 = scmp.lt.u32.totalorder %s650_s19, %s887_s6 }
 0x230   : > { %p652_p3 = pnand %p651_p2, %p555_p11 }
 0x232   : > { %p653_p4 = pneg %p652_p3 }
 0x234   : > { %p658_p6 = pnand %p656_p9, %p653_p4 }
 0x236   : > { %661 = shalt.err (!%p658_p6)
}
 0x237   : > { %541 = dma.vmem_to_hbm [thread:$0]  (%p555_p11), %s438_s14, 16, %s887_s6, [#allocation6]  }
 0x238   : > { %675 = dma.done.wait (%p555_p11), [#allocation6], 16  }
 0x239   : > { %677 = vsyncadd (%p555_p11), [#allocation6], 4294967280 }
 0x23a PF: > { %s19_s21 = sadd.s32 1, %s680_s21  }
 0x23b   : > { %p16_p10 = scmp.ge.s32.totalorder %s19_s21, 12  }
 0x23d   :  { %18 = sbr.rel (!%p16_p10) target bundleno = 3 (0x3), region = 91 }
 0x244   :  { %450 = vsyncpa [#allocation5], 1 }
 0x245   :  { %452 = vsyncpa [#allocation5 + $0x1], 1 }
 0x246   :  { %453 = vsyncpa [#allocation8], 1 }
 0x247   :  { %454 = vsyncpa [#allocation6], 1 }
 0x248   :  { %456 = vsyncpa [#allocation6 + $0x1], 1 }

</bundles_post_ra>
